<compile_context>
chip_gen: v7x
topology: tpu7x:2x2x1
jax: 0.10.0
libtpu: 0.0.40
codegen_flags: <defaults>
</compile_context>

<pallas_src>
import jax
import jax.numpy as jnp
from jax import lax
from jax.experimental import pallas as pl
from jax.experimental.pallas import tpu as pltpu

# ---- model dims (small, deterministic) ----
B = 2            # batch (utterances)
T = 16           # time frames
F_DIM = 32       # input feature dim
HID = 32         # hidden dim
A = 4            # anchors (scales) per frame
NUM_CLASS = 2    # output_dim of RPN_KWS (fg/bg per anchor)

BT = B * T                       # 32 rows processed in one grid step
HEAD_DIM = 4 * A + A * NUM_CLASS  # fused head cols: [dx|dx|dw|dw|cls] = 24
OUT_DIM = 2 * A + A * NUM_CLASS   # merged output cols: [x1|x2|cls] = 16


def rpn_kws_kernel(act_lens_ref,                 # SMEM [B] float32
                   speech_ref,                   # VMEM [BT, F]
                   w1_ref, b1_ref,               # feature_extractor
                   w2_ref, b2_ref,               # rpn trunk
                   wh_ref, bh_ref,               # fused head [HID, HEAD_DIM]
                   scale2_ref,                   # [1, 2A]  = [scale | scale]
                   halfsign_ref,                 # [1, 2A]  = [-.5*scale | +.5*scale]
                   out_ref):                     # [BT, OUT_DIM] = [x1|x2|cls]
    x = speech_ref[...]                                               # [BT, F]

    # feature_extractor: per-frame dense + ReLU
    base = jnp.maximum(
        jnp.dot(x, w1_ref[...], preferred_element_type=jnp.float32) + b1_ref[...],
        0.0)

    # rpn trunk
    hid = jnp.maximum(
        jnp.dot(base, w2_ref[...], preferred_element_type=jnp.float32) + b2_ref[...],
        0.0)

    # fused heads: one matmul -> [dx|dx|dw|dw|cls]
    head = jnp.dot(hid, wh_ref[...], preferred_element_type=jnp.float32) + bh_ref[...]
    dxdx = head[:, :2 * A]                # [BT, 2A]
    dwdw = head[:, 2 * A:4 * A]           # [BT, 2A]
    cls = head[:, 4 * A:]                 # [BT, A*C]

    # decode (dx, dw) onto anchors; output lanes are already [x1 | x2]
    t2 = (lax.broadcasted_iota(jnp.int32, (BT, 2 * A), 0) % T).astype(jnp.float32)
    ctr = t2 + dxdx * scale2_ref[...]
    prop = ctr + halfsign_ref[...] * jnp.exp(dwdw)

    # clip_boxes: per-row valid-frame limit of the row's utterance
    row = lax.broadcasted_iota(jnp.int32, (BT, 1), 0)
    lim = (act_lens_ref[0] - 1.0) * jnp.ones((BT, 1), jnp.float32)
    for bi in range(1, B):
        lim = jnp.where(row >= bi * T, act_lens_ref[bi] - 1.0, lim)
    prop = jnp.clip(prop, 0.0, lim)

    out_ref[:, :2 * A] = prop
    out_ref[:, 2 * A:] = cls


def _full_spec(shape):
    return pl.BlockSpec(shape, lambda i: (0,) * len(shape))


def rpn_kws_forward(speech, act_lens, params):
    """Returns (rois [B,T*A,2], rpn_cls_score [B,T*A,C], anchors_per_utt [T*A,2])."""
    w1, b1, w2, b2, wc, bc, wb, bb, scales = params

    # fuse the two rpn heads (init-time in a real model): [dx|dx|dw|dw|cls]
    dx_w, dw_w = wb[:, :A], wb[:, A:]
    dx_b, dw_b = bb[:, :A], bb[:, A:]
    wh = jnp.concatenate([dx_w, dx_w, dw_w, dw_w, wc], axis=1)        # [HID, HEAD_DIM]
    bh = jnp.concatenate([dx_b, dx_b, dw_b, dw_b, bc], axis=1)        # [1, HEAD_DIM]
    scale2 = jnp.concatenate([scales, scales], axis=1)                # [1, 2A]
    halfsign = jnp.concatenate([-0.5 * scales, 0.5 * scales], axis=1)  # [1, 2A]

    speech2 = speech.reshape(BT, F_DIM)

    grid_spec = pltpu.PrefetchScalarGridSpec(
        num_scalar_prefetch=0,
        grid=(1,),
        in_specs=[
            pl.BlockSpec(memory_space=pltpu.MemorySpace.SMEM),        # act_lens
            _full_spec((BT, F_DIM)),                                  # speech
            _full_spec((F_DIM, HID)), _full_spec((1, HID)),
            _full_spec((HID, HID)), _full_spec((1, HID)),
            _full_spec((HID, HEAD_DIM)), _full_spec((1, HEAD_DIM)),
            _full_spec((1, 2 * A)), _full_spec((1, 2 * A)),
        ],
        out_specs=_full_spec((BT, OUT_DIM)),
    )
    out = pl.pallas_call(
        rpn_kws_kernel,
        out_shape=jax.ShapeDtypeStruct((BT, OUT_DIM), jnp.float32),
        grid_spec=grid_spec,
        compiler_params=pltpu.CompilerParams(dimension_semantics=("arbitrary",)),
    )(act_lens, speech2, w1, b1, w2, b2, wh, bh, scale2, halfsign)

    # unpack merged output slab in plain JAX
    out3 = out.reshape(B, T, OUT_DIM)
    rois = jnp.stack([out3[..., :A], out3[..., A:2 * A]], axis=-1).reshape(B, T * A, 2)
    cls = out3[..., 2 * A:].reshape(B, T * A, NUM_CLASS)

    # anchors are input-independent -> computed outside the kernel
    t = jnp.arange(T, dtype=jnp.float32)[:, None]                     # [T, 1]
    anchors_per_utt = jnp.stack([t - 0.5 * scales, t + 0.5 * scales],
                                axis=-1).reshape(T * A, 2)
    return rois, cls, anchors_per_utt


def rpn_kws_reference(speech, act_lens, params):
    """Pure-JAX reference for correctness checking."""
    w1, b1, w2, b2, wc, bc, wb, bb, scales = params
    base = jnp.maximum(speech @ w1 + b1, 0.0)
    hid = jnp.maximum(base @ w2 + b2, 0.0)
    cls = hid @ wc + bc                                # [B, T, A*C]
    bbox = hid @ wb + bb                               # [B, T, 2A]

    t_idx = jnp.arange(T, dtype=jnp.float32)[:, None] * jnp.ones((1, A), jnp.float32)
    anc_x1 = t_idx - 0.5 * scales
    anc_x2 = t_idx + 0.5 * scales
    dx, dw = bbox[..., :A], bbox[..., A:]
    ctr = t_idx + dx * scales
    w_new = scales * jnp.exp(dw)
    px1 = ctr - 0.5 * w_new
    px2 = ctr + 0.5 * w_new
    lim = act_lens[:, None, None] - 1.0
    px1 = jnp.clip(px1, 0.0, lim)
    px2 = jnp.clip(px2, 0.0, lim)

    rois = jnp.stack([px1, px2], axis=-1).reshape(B, T * A, 2)
    anchors = jnp.stack([jnp.broadcast_to(anc_x1, px1.shape),
                         jnp.broadcast_to(anc_x2, px2.shape)],
                        axis=-1).reshape(B, T * A, 2)
    cls = cls.reshape(B, T, A, NUM_CLASS).reshape(B, T * A, NUM_CLASS)
    return rois, cls, anchors[0]


def make_params(key):
    ks = jax.random.split(key, 8)
    s = 0.1
    w1 = s * jax.random.normal(ks[0], (F_DIM, HID), jnp.float32)
    b1 = s * jax.random.normal(ks[1], (1, HID), jnp.float32)
    w2 = s * jax.random.normal(ks[2], (HID, HID), jnp.float32)
    b2 = s * jax.random.normal(ks[3], (1, HID), jnp.float32)
    wc = s * jax.random.normal(ks[4], (HID, A * NUM_CLASS), jnp.float32)
    bc = s * jax.random.normal(ks[5], (1, A * NUM_CLASS), jnp.float32)
    wb = s * jax.random.normal(ks[6], (HID, 2 * A), jnp.float32)
    bb = s * jax.random.normal(ks[7], (1, 2 * A), jnp.float32)
    scales = jnp.array([[2.0, 4.0, 8.0, 16.0]], jnp.float32)          # anchor widths
    return (w1, b1, w2, b2, wc, bc, wb, bb, scales)


if __name__ == "__main__":
    key = jax.random.PRNGKey(0)
    k_x, k_p = jax.random.split(key)
    speech = jax.random.normal(k_x, (B, T, F_DIM), jnp.float32)
    act_lens = jnp.array([16.0, 12.0], jnp.float32)
    params = make_params(k_p)

    fwd = jax.jit(rpn_kws_forward)
    rois, cls_score, anchors_per_utt = jax.block_until_ready(
        fwd(speech, act_lens, params))

    rois_ref, cls_ref, anc_ref = rpn_kws_reference(speech, act_lens, params)
    assert rois.shape == (B, T * A, 2)
    assert cls_score.shape == (B, T * A, NUM_CLASS)
    assert anchors_per_utt.shape == (T * A, 2)
    assert jnp.allclose(rois, rois_ref, rtol=1e-2, atol=1e-2)
    assert jnp.allclose(cls_score, cls_ref, rtol=1e-2, atol=1e-2)
    assert jnp.allclose(anchors_per_utt, anc_ref, rtol=1e-2, atol=1e-2)

    print("KERNEL_OK")
</pallas_src>

<mosaic_0001>
module attributes {stable_mosaic.version = 11 : i64} {
  func.func @rpn_kws_kernel(%arg0: i32, %arg1: memref<2xf32, #tpu.memory_space<smem>>, %arg2: memref<32x32xf32, #tpu.memory_space<vmem>>, %arg3: memref<32x32xf32, #tpu.memory_space<vmem>>, %arg4: memref<1x32xf32, #tpu.memory_space<vmem>>, %arg5: memref<32x32xf32, #tpu.memory_space<vmem>>, %arg6: memref<1x32xf32, #tpu.memory_space<vmem>>, %arg7: memref<32x24xf32, #tpu.memory_space<vmem>>, %arg8: memref<1x24xf32, #tpu.memory_space<vmem>>, %arg9: memref<1x8xf32, #tpu.memory_space<vmem>>, %arg10: memref<1x8xf32, #tpu.memory_space<vmem>>, %arg11: memref<32x16xf32, #tpu.memory_space<vmem>>) attributes {dimension_semantics = [#tpu.dimension_semantics<arbitrary>], iteration_bounds = array<i64: 1>, scalar_prefetch = 0 : i64, scratch_operands = 0 : i64, tpu.core_type = #tpu.core_type<tc>, window_params = [{transform_indices = @transform_0, window_bounds = array<i64: 2>}, {pipeline_mode = #tpu.pipeline_mode<synchronous>, transform_indices = @transform_1, window_bounds = array<i64: 32, 32>}, {pipeline_mode = #tpu.pipeline_mode<synchronous>, transform_indices = @transform_2, window_bounds = array<i64: 32, 32>}, {pipeline_mode = #tpu.pipeline_mode<synchronous>, transform_indices = @transform_3, window_bounds = array<i64: 1, 32>}, {pipeline_mode = #tpu.pipeline_mode<synchronous>, transform_indices = @transform_4, window_bounds = array<i64: 32, 32>}, {pipeline_mode = #tpu.pipeline_mode<synchronous>, transform_indices = @transform_5, window_bounds = array<i64: 1, 32>}, {pipeline_mode = #tpu.pipeline_mode<synchronous>, transform_indices = @transform_6, window_bounds = array<i64: 32, 24>}, {pipeline_mode = #tpu.pipeline_mode<synchronous>, transform_indices = @transform_7, window_bounds = array<i64: 1, 24>}, {pipeline_mode = #tpu.pipeline_mode<synchronous>, transform_indices = @transform_8, window_bounds = array<i64: 1, 8>}, {pipeline_mode = #tpu.pipeline_mode<synchronous>, transform_indices = @transform_9, window_bounds = array<i64: 1, 8>}, {pipeline_mode = #tpu.pipeline_mode<synchronous>, transform_indices = @transform_10, window_bounds = array<i64: 32, 16>}]} {
    %c0 = arith.constant 0 : index
    %c0_0 = arith.constant 0 : index
    %0 = vector.load %arg2[%c0, %c0_0] : memref<32x32xf32, #tpu.memory_space<vmem>>, vector<32x32xf32>
    %c0_1 = arith.constant 0 : index
    %c0_2 = arith.constant 0 : index
    %1 = vector.load %arg3[%c0_1, %c0_2] : memref<32x32xf32, #tpu.memory_space<vmem>>, vector<32x32xf32>
    %cst = arith.constant dense<0.000000e+00> : vector<32x32xf32>
    %2 = tpu.matmul %0, %1, %cst {dimension_numbers = #tpu.dot_dimension_numbers<[1], [0], [0], [1], [0, 0, 1, 1], [], []>} : vector<32x32xf32>, vector<32x32xf32>, vector<32x32xf32> -> vector<32x32xf32>
    %c0_3 = arith.constant 0 : index
    %c0_4 = arith.constant 0 : index
    %3 = vector.load %arg4[%c0_3, %c0_4] : memref<1x32xf32, #tpu.memory_space<vmem>>, vector<1x32xf32>
    %4 = vector.broadcast %3 : vector<1x32xf32> to vector<32x32xf32>
    %5 = arith.addf %2, %4 : vector<32x32xf32>
    %cst_5 = arith.constant 0.000000e+00 : f32
    %6 = vector.broadcast %cst_5 : f32 to vector<32x32xf32>
    %7 = arith.maximumf %5, %6 : vector<32x32xf32>
    %c0_6 = arith.constant 0 : index
    %c0_7 = arith.constant 0 : index
    %8 = vector.load %arg5[%c0_6, %c0_7] : memref<32x32xf32, #tpu.memory_space<vmem>>, vector<32x32xf32>
    %cst_8 = arith.constant dense<0.000000e+00> : vector<32x32xf32>
    %9 = tpu.matmul %7, %8, %cst_8 {dimension_numbers = #tpu.dot_dimension_numbers<[1], [0], [0], [1], [0, 0, 1, 1], [], []>} : vector<32x32xf32>, vector<32x32xf32>, vector<32x32xf32> -> vector<32x32xf32>
    %c0_9 = arith.constant 0 : index
    %c0_10 = arith.constant 0 : index
    %10 = vector.load %arg6[%c0_9, %c0_10] : memref<1x32xf32, #tpu.memory_space<vmem>>, vector<1x32xf32>
    %11 = vector.broadcast %10 : vector<1x32xf32> to vector<32x32xf32>
    %12 = arith.addf %9, %11 : vector<32x32xf32>
    %cst_11 = arith.constant 0.000000e+00 : f32
    %13 = vector.broadcast %cst_11 : f32 to vector<32x32xf32>
    %14 = arith.maximumf %12, %13 : vector<32x32xf32>
    %c0_12 = arith.constant 0 : index
    %c0_13 = arith.constant 0 : index
    %15 = vector.load %arg7[%c0_12, %c0_13] : memref<32x24xf32, #tpu.memory_space<vmem>>, vector<32x24xf32>
    %cst_14 = arith.constant dense<0.000000e+00> : vector<32x24xf32>
    %16 = tpu.matmul %14, %15, %cst_14 {dimension_numbers = #tpu.dot_dimension_numbers<[1], [0], [0], [1], [0, 0, 1, 1], [], []>} : vector<32x32xf32>, vector<32x24xf32>, vector<32x24xf32> -> vector<32x24xf32>
    %c0_15 = arith.constant 0 : index
    %c0_16 = arith.constant 0 : index
    %17 = vector.load %arg8[%c0_15, %c0_16] : memref<1x24xf32, #tpu.memory_space<vmem>>, vector<1x24xf32>
    %18 = vector.broadcast %17 : vector<1x24xf32> to vector<32x24xf32>
    %19 = arith.addf %16, %18 : vector<32x24xf32>
    %20 = vector.extract_strided_slice %19 {offsets = [0, 0], sizes = [32, 8], strides = [1, 1]} : vector<32x24xf32> to vector<32x8xf32>
    %21 = vector.extract_strided_slice %19 {offsets = [0, 8], sizes = [32, 8], strides = [1, 1]} : vector<32x24xf32> to vector<32x8xf32>
    %22 = vector.extract_strided_slice %19 {offsets = [0, 16], sizes = [32, 8], strides = [1, 1]} : vector<32x24xf32> to vector<32x8xf32>
    %23 = tpu.iota {dimensions = array<i32: 0>} : vector<32x8xi32>
    %c16_i32 = arith.constant 16 : i32
    %c0_i32 = arith.constant 0 : i32
    %24 = arith.cmpi eq, %c16_i32, %c0_i32 : i32
    %c1_i32 = arith.constant 1 : i32
    %25 = arith.select %24, %c1_i32, %c16_i32 : i32
    %26 = vector.broadcast %25 : i32 to vector<32x8xi32>
    %27 = arith.remsi %23, %26 : vector<32x8xi32>
    %c0_i32_17 = arith.constant 0 : i32
    %28 = vector.broadcast %c0_i32_17 : i32 to vector<32x8xi32>
    %29 = arith.cmpi ne, %27, %28 : vector<32x8xi32>
    %c0_i32_18 = arith.constant 0 : i32
    %30 = vector.broadcast %c0_i32_18 : i32 to vector<32x8xi32>
    %31 = arith.cmpi slt, %27, %30 : vector<32x8xi32>
    %c0_i32_19 = arith.constant 0 : i32
    %32 = arith.cmpi slt, %25, %c0_i32_19 : i32
    %33 = vector.broadcast %32 : i1 to vector<32x8xi1>
    %34 = vector.broadcast %33 : vector<32x8xi1> to vector<32x8xi1>
    %35 = arith.xori %31, %34 : vector<32x8xi1>
    %36 = arith.andi %35, %29 : vector<32x8xi1>
    %37 = vector.broadcast %25 : i32 to vector<32x8xi32>
    %38 = arith.addi %27, %37 : vector<32x8xi32>
    %39 = arith.select %36, %38, %27 : vector<32x8xi1>, vector<32x8xi32>
    %40 = arith.sitofp %39 : vector<32x8xi32> to vector<32x8xf32>
    %c0_20 = arith.constant 0 : index
    %c0_21 = arith.constant 0 : index
    %41 = vector.load %arg9[%c0_20, %c0_21] : memref<1x8xf32, #tpu.memory_space<vmem>>, vector<1x8xf32>
    %42 = vector.broadcast %41 : vector<1x8xf32> to vector<32x8xf32>
    %43 = arith.mulf %20, %42 : vector<32x8xf32>
    %44 = arith.addf %40, %43 : vector<32x8xf32>
    %c0_22 = arith.constant 0 : index
    %c0_23 = arith.constant 0 : index
    %45 = vector.load %arg10[%c0_22, %c0_23] : memref<1x8xf32, #tpu.memory_space<vmem>>, vector<1x8xf32>
    %46 = math.exp %21 : vector<32x8xf32>
    %47 = vector.broadcast %45 : vector<1x8xf32> to vector<32x8xf32>
    %48 = arith.mulf %47, %46 : vector<32x8xf32>
    %49 = arith.addf %44, %48 : vector<32x8xf32>
    %50 = tpu.iota {dimensions = array<i32: 0>} : vector<32x1xi32>
    %c0_24 = arith.constant 0 : index
    %51 = memref.load %arg1[%c0_24] : memref<2xf32, #tpu.memory_space<smem>>
    %cst_25 = arith.constant 1.000000e+00 : f32
    %52 = arith.subf %51, %cst_25 : f32
    %cst_26 = arith.constant 1.000000e+00 : f32
    %53 = vector.broadcast %cst_26 : f32 to vector<32x1xf32>
    %54 = vector.broadcast %52 : f32 to vector<32x1xf32>
    %55 = arith.mulf %54, %53 : vector<32x1xf32>
    %c16_i32_27 = arith.constant 16 : i32
    %56 = vector.broadcast %c16_i32_27 : i32 to vector<32x1xi32>
    %57 = arith.cmpi sge, %50, %56 : vector<32x1xi32>
    %c1 = arith.constant 1 : index
    %58 = memref.load %arg1[%c1] : memref<2xf32, #tpu.memory_space<smem>>
    %cst_28 = arith.constant 1.000000e+00 : f32
    %59 = arith.subf %58, %cst_28 : f32
    %60 = vector.broadcast %59 : f32 to vector<32x1xf32>
    %61 = arith.select %57, %60, %55 : vector<32x1xi1>, vector<32x1xf32>
    %cst_29 = arith.constant 0.000000e+00 : f32
    %62 = vector.broadcast %cst_29 : f32 to vector<32x8xf32>
    %63 = arith.maximumf %62, %49 : vector<32x8xf32>
    %64 = vector.broadcast %61 : vector<32x1xf32> to vector<32x8xf32>
    %65 = arith.minimumf %64, %63 : vector<32x8xf32>
    %c0_30 = arith.constant 0 : index
    %c0_31 = arith.constant 0 : index
    %66 = vector.load %arg11[%c0_30, %c0_31] : memref<32x16xf32, #tpu.memory_space<vmem>>, vector<32x8xf32>
    tpu.vector_store %arg11[%c0_30, %c0_31], %65 {strides = array<i32>} : memref<32x16xf32, #tpu.memory_space<vmem>>, vector<32x8xf32>,
    %c0_32 = arith.constant 0 : index
    %c8 = arith.constant 8 : index
    %67 = vector.load %arg11[%c0_32, %c8] : memref<32x16xf32, #tpu.memory_space<vmem>>, vector<32x8xf32>
    tpu.vector_store %arg11[%c0_32, %c8], %22 {strides = array<i32>} : memref<32x16xf32, #tpu.memory_space<vmem>>, vector<32x8xf32>,
    return
  }
  func.func @transform_0(%arg0: i32) -> i32 {
    %c0_i32 = arith.constant 0 : i32
    %c0_i32_0 = arith.constant 0 : i32
    return %c0_i32 : i32
  }
  func.func @transform_1(%arg0: i32) -> (i32, i32) {
    %c0_i32 = arith.constant 0 : i32
    %c0_i32_0 = arith.constant 0 : i32
    %c0_i32_1 = arith.constant 0 : i32
    return %c0_i32, %c0_i32_0 : i32, i32
  }
  func.func @transform_2(%arg0: i32) -> (i32, i32) {
    %c0_i32 = arith.constant 0 : i32
    %c0_i32_0 = arith.constant 0 : i32
    %c0_i32_1 = arith.constant 0 : i32
    return %c0_i32, %c0_i32_0 : i32, i32
  }
  func.func @transform_3(%arg0: i32) -> (i32, i32) {
    %c0_i32 = arith.constant 0 : i32
    %c0_i32_0 = arith.constant 0 : i32
    %c0_i32_1 = arith.constant 0 : i32
    return %c0_i32, %c0_i32_0 : i32, i32
  }
  func.func @transform_4(%arg0: i32) -> (i32, i32) {
    %c0_i32 = arith.constant 0 : i32
    %c0_i32_0 = arith.constant 0 : i32
    %c0_i32_1 = arith.constant 0 : i32
    return %c0_i32, %c0_i32_0 : i32, i32
  }
  func.func @transform_5(%arg0: i32) -> (i32, i32) {
    %c0_i32 = arith.constant 0 : i32
    %c0_i32_0 = arith.constant 0 : i32
    %c0_i32_1 = arith.constant 0 : i32
    return %c0_i32, %c0_i32_0 : i32, i32
  }
  func.func @transform_6(%arg0: i32) -> (i32, i32) {
    %c0_i32 = arith.constant 0 : i32
    %c0_i32_0 = arith.constant 0 : i32
    %c0_i32_1 = arith.constant 0 : i32
    return %c0_i32, %c0_i32_0 : i32, i32
  }
  func.func @transform_7(%arg0: i32) -> (i32, i32) {
    %c0_i32 = arith.constant 0 : i32
    %c0_i32_0 = arith.constant 0 : i32
    %c0_i32_1 = arith.constant 0 : i32
    return %c0_i32, %c0_i32_0 : i32, i32
  }
  func.func @transform_8(%arg0: i32) -> (i32, i32) {
    %c0_i32 = arith.constant 0 : i32
    %c0_i32_0 = arith.constant 0 : i32
    %c0_i32_1 = arith.constant 0 : i32
    return %c0_i32, %c0_i32_0 : i32, i32
  }
  func.func @transform_9(%arg0: i32) -> (i32, i32) {
    %c0_i32 = arith.constant 0 : i32
    %c0_i32_0 = arith.constant 0 : i32
    %c0_i32_1 = arith.constant 0 : i32
    return %c0_i32, %c0_i32_0 : i32, i32
  }
  func.func @transform_10(%arg0: i32) -> (i32, i32) {
    %c0_i32 = arith.constant 0 : i32
    %c0_i32_0 = arith.constant 0 : i32
    %c0_i32_1 = arith.constant 0 : i32
    return %c0_i32, %c0_i32_0 : i32, i32
  }
}

</mosaic_0001>

<bundles_post_ra>
// kernel: rpn_kws_forward.1
= control target key start
LH: loop header
LB: loop body
LE: loop exit
PB: predicated region body
PF: predicated region fallthrough
CT: control target
= control target key end

     0   :  { %15 = vsyncpa [#allocation3], 0  ;;  %s857_s0 = inlined_call_operand.vmem [shape: f32[2], index: 0, kind: input, shape index: {}]   ;;  %s858_s1 = inlined_call_operand.vmem [shape: f32[32,32], index: 1, kind: input, shape index: {}]   ;;  %s859_s2 = inlined_call_operand.vmem [shape: f32[32,32], index: 2, kind: input, shape index: {}]   ;;  %s860_s3 = inlined_call_operand.vmem [shape: f32[1,32], index: 3, kind: input, shape index: {}]   ;;  %s861_s4 = inlined_call_operand.vmem [shape: f32[32,32], index: 4, kind: input, shape index: {}]   ;;  %s862_s5 = inlined_call_operand.vmem [shape: f32[1,32], index: 5, kind: input, shape index: {}]   ;;  %s863_s6 = inlined_call_operand.vmem [shape: f32[32,24], index: 6, kind: input, shape index: {}]   ;;  %s864_s7 = inlined_call_operand.vmem [shape: f32[1,24], index: 7, kind: input, shape index: {}]   ;;  %s865_s8 = inlined_call_operand.vmem [shape: f32[1,8], index: 8, kind: input, shape index: {}]   ;;  %s866_s9 = inlined_call_operand.vmem [shape: f32[1,8], index: 9, kind: input, shape index: {}]   ;;  %s867_s10 = inlined_call_operand.vmem [shape: f32[32,16], index: 10, kind: output, shape index: {}]  }
   0x1   :  { %s22_s15 = sshll.u32 %s857_s0, 4  ;;  %s23_s15 = int_to_ptr.vmem [resolvable:$true] %s22_s15 }
   0x2   :  { %s673_s16 = scalar_lea.vmem %s23_s15, 16  ;;  %p678_p1 = scmp.lt.s32.totalorder %s23_s15, %s23_s15 }
   0x3   :  { %p674_p0 = scmp.ne.s32.totalorder %s23_s15, %s673_s16  ;;  %p679_p2 = scmp.lt.s32.totalorder %s673_s16, %s673_s16 }
   0x5   :  { %p680_p3 = por %p679_p2, %p678_p1 }
   0x7   :  { %p681_p4 = pnand %p680_p3, %p674_p0 }
   0x9   :  { %684 = shalt.err (!%p681_p4)
}
   0xa   :  { %s687_s17 = smov [#allocation2]  }
   0xb   :  { %25 = dma.vmem_to_smem %s23_s15, 16, %s687_s17, [#allocation3]  }
   0xc   :  { %685 = dma.done.wait [#allocation3], 16  }
   0xd   :  { %686 = vsyncadd [#allocation3], 4294967280 }
   0xe   :  { %47 = sfence }
   0xf   :  { %v52_v0 = vld [vmem:[%s859_s2] sm:$0xff]  ;;  %v53_v1 = vld [vmem:[%s859_s2 + $0x8] sm:$0xff]  ;;  %v54_v2 = vld [vmem:[%s859_s2 + $0x10] sm:$0xff]  ;;  %vm63_vm0 = vcmask 261120   ;;  %s688_s28 = smov 120   ;;  %vm518_vm1 = vcmask 64512  }
  0x10   :  { %v635_v3 = vpack.c.bf16 %v53_v1, %v52_v0  ;;  %v55_v4 = vld [vmem:[%s859_s2 + $0x18] sm:$0xff]  ;;  %v48_v5 = vld [vmem:[%s858_s1] sm:$0xff]  ;;  %v166_v8 = vld [vmem:[%s861_s4 + $0x8] sm:$0xff]  ;;  %v385_v1 = vlaneseq  ;;  %s819_s2 = sld [smem:[#allocation2 + $0x1]]  ;;  %vm539_vm2 = vcmask 130112  }
  0x11   :  { %v639_v6 = vpack.c.bf16 %v55_v4, %v54_v2  ;;  %601 = vmatprep.mubr.msk.f32.mxu0 %vm63_vm0, %v48_v5  ;;  %v165_v7 = vld [vmem:[%s861_s4] sm:$0xff]  ;;  %v49_v10 = vld [vmem:[%s858_s1 + $0x8] sm:$0xff]  ;;  %v50_v11 = vld [vmem:[%s858_s1 + $0x10] sm:$0xff] }
  0x12   :  { %636 = vmatprep.subr.bf16.mxu0 %v635_v3  ;;  %v643_v9 = vpack.c.bf16 %v166_v8, %v165_v7  ;;  %v51_v12 = vld [vmem:[%s858_s1 + $0x18] sm:$0xff]  ;;  %v167_v13 = vld [vmem:[%s861_s4 + $0x10] sm:$0xff]  ;;  %v277_v16 = vld [vmem:[%s863_s6] sm:$0xff]  ;;  %v386_v2 = vshrl.u32 %v385_v1, 7 }
  0x13   :  { %638 = vmatpush3.bf16.msra.mxu0 %v635_v3  ;;  %v168_v14 = vld [vmem:[%s861_s4 + $0x18] sm:$0xff]  ;;  %v278_v17 = vld [vmem:[%s863_s6 + $0x8] sm:$0xff]  ;;  %v549_v19 = vld [vmem:[%s860_s3] ss:$0 sm:$0xff] }
  0x14   :  { %640 = vmatprep.subr.bf16.mxu0 %v639_v6  ;;  %644 = vmatprep.subr.bf16.mxu1 %v643_v9  ;;  %v647_v15 = vpack.c.bf16 %v168_v14, %v167_v13  ;;  %v651_v18 = vpack.c.bf16 %v278_v17, %v277_v16  ;;  %v279_v32 = vld [vmem:[%s863_s6 + $0x10] sm:$0xff]  ;;  %v280_v33 = vld [vmem:[%s863_s6 + $0x18] sm:$0xff]  ;;  %v554_v35 = vld [vmem:[%s862_s5] ss:$0 sm:$0xff]  ;;  %v387_v3 = vadd.s32 8, %v386_v2  ;;  %v394_v4 = vand.u32 15, %v386_v2 }
  0x15   :  { %646 = vmatpush3.bf16.msra.mxu1 %v643_v9  ;;  %v655_v34 = vpack.c.bf16 %v280_v33, %v279_v32  ;;  %v559_v48 = vld [vmem:[%s864_s7] ss:$0 sm:$0xff]  ;;  %s496_s7 = sld [smem:[#allocation2]]  ;;  %v388_v5 = vadd.s32 16, %v386_v2  ;;  %v389_v8 = vadd.s32 24, %v386_v2 }
  0x16   :  { %648 = vmatprep.subr.bf16.mxu1 %v647_v15  ;;  %v401_v7 = vand.u32 15, %v387_v3 }
  0x17   :  { %642 = vmatpush3.bf16.msra.mxu0 %v639_v6  ;;  %v564_v6 = vld [vmem:[%s865_s8] ss:$0 sm:$0xff]  ;;  %v415_v16 = vand.u32 15, %v389_v8  ;;  %s568_s8 = sadd.f32 -1.0, %s819_s2 }
  0x18   :  { %652 = vmatprep.subr.bf16.mxu0 %v651_v18 }
  0x19   :  { %650 = vmatpush3.bf16.msra.mxu1 %v647_v15  ;;  %v439_v15 = vcvt.s32.f32 %v401_v7 }
  0x1a   :  { %602 = vmatmul.mubr.msk.f32.vlgmr.msra.gmra.mrb[0].mxu0 %vm63_vm0, %v49_v10  ;;  %659 = vmatprep.subr.bf16.mxu1 %v651_v18  ;;  %v438_v10 = vcvt.s32.f32 %v394_v4 }
  0x1b   :  { %604 = vmatprep.mubr.msk.f32.mxu0 %vm63_vm0, %v50_v11  ;;  %654 = vmatpush3.bf16.msra.mxu0 %v651_v18  ;;  %v408_v11 = vand.u32 15, %v388_v5  ;;  %s566_s13 = sadd.f32 -1.0, %s496_s7 }
  0x1c   :  { %656 = vmatprep.subr.bf16.mxu0 %v655_v34 }
  0x1e   :  { %605 = vmatmul.mubr.msk.f32.gmra.mrb[2].mxu0 %vm63_vm0, %v51_v12  ;;  %v565_v12 = vld [vmem:[%s866_s9] ss:$0 sm:$0xff] }
  0x1f   :  { %658 = vmatpush3.bf16.msra.mxu0 %v655_v34 }
  0xed   :  { %v603_v20 = vpop.f32.mrb[0].mxu0 }
  0xee   :  { %v148_v21 = vadd.f32 %v603_v20, %v549_v19  ;;  %v142_v22 = vpop.f32.mrb[1].mxu0  ;;  %v440_v20 = vcvt.s32.f32 %v408_v11 }
  0xef   :  { %v143_v23 = vadd.f32 %v549_v19, %v142_v22 }
  0xf0   :  { %v162_v26 = vmax.f32 %v148_v21, 0.0 }
  0xf1   :  { %v161_v24 = vmax.f32 %v143_v23, 0.0  ;;  %v606_v25 = vpop.f32.mrb[2].mxu0  ;;  %v498_v23 = vstv %s566_s13 }
  0xf2   :  { %v158_v27 = vadd.f32 %v606_v25, %v549_v19  ;;  %v152_v28 = vpop.f32.mrb[3].mxu0 }
  0xf3   :  { %v153_v29 = vadd.f32 %v549_v19, %v152_v28  ;;  %615 = vmatprep.mubr.msk.f32.mxu1 %vm63_vm0, %v161_v24 }
  0xf4   :  { %616 = vmatmul.mubr.msk.f32.vlgmr.msra.gmra.mrb[0].mxu1 %vm63_vm0, %v162_v26  ;;  %v164_v31 = vmax.f32 %v158_v27, 0.0  ;;  %v441_v27 = vcvt.s32.f32 %v415_v16 }
  0xf5   :  { %v163_v30 = vmax.f32 %v153_v29, 0.0  ;;  %661 = vmatpush3.bf16.msra.mxu1 %v651_v18 }
  0xf6   :  { %660 = vmatprep.subr.bf16.mxu1 %v655_v34 }
  0xf7   :  { %618 = vmatprep.mubr.msk.f32.mxu1 %vm63_vm0, %v163_v30 }
  0xf8   :  { %619 = vmatmul.mubr.msk.f32.gmra.mrb[2].mxu1 %vm63_vm0, %v164_v31 }
  0xf9   :  { %662 = vmatpush3.bf16.msra.mxu1 %v655_v34 }
 0x1c7   :  { %v617_v36 = vpop.f32.mrb[0].mxu1 }
 0x1c8   :  { %v260_v37 = vadd.f32 %v617_v36, %v554_v35  ;;  %v254_v38 = vpop.f32.mrb[1].mxu1 }
 0x1c9   :  { %v255_v39 = vadd.f32 %v554_v35, %v254_v38 }
 0x1ca   :  { %v274_v42 = vmax.f32 %v260_v37, 0.0 }
 0x1cb   :  { %v273_v40 = vmax.f32 %v255_v39, 0.0  ;;  %v620_v41 = vpop.f32.mrb[2].mxu1 }
 0x1cc   :  { %v270_v43 = vadd.f32 %v620_v41, %v554_v35  ;;  %v264_v44 = vpop.f32.mrb[3].mxu1 }
 0x1cd   :  { %v265_v45 = vadd.f32 %v554_v35, %v264_v44  ;;  %629 = vmatprep.mubr.msk.f32.mxu0 %vm63_vm0, %v273_v40  ;;  %v505_v35 = vstv %s568_s8 }
 0x1ce   :  { %630 = vmatmul.mubr.msk.f32.vlgmr.msra.gmra.mrb[4].mxu0 %vm63_vm0, %v274_v42  ;;  %v276_v47 = vmax.f32 %v270_v43, 0.0 }
 0x1cf   :  { %v275_v46 = vmax.f32 %v265_v45, 0.0 }
 0x1d1   :  { %632 = vmatprep.mubr.msk.f32.mxu1 %vm63_vm0, %v275_v46 }
 0x1d2   :  { %633 = vmatmul.mubr.msk.f32.vlgmr.msra.gmra.mrb[4].mxu1 %vm63_vm0, %v276_v47 }
 0x2a1   :  { %v631_v49 = vpop.f32.mrb[4].mxu0 }
 0x2a2   :  { %v372_v50 = vadd.f32 %v631_v49, %v559_v48  ;;  %v366_v51 = vpop.f32.mrb[5].mxu0 }
 0x2a3   :  { %v367_v52 = vadd.f32 %v559_v48, %v366_v51 }
 0x2a4   :  { %v460_v55 = vmul.f32 1.442695, %v372_v50  ;;  %v450_v13 = vmul.f32 %v564_v6, %v372_v50 }
 0x2a5   :  { %v458_v53 = vmul.f32 1.442695, %v367_v52  ;;  %v634_v54 = vpop.f32.mrb[4].mxu1  ;;  %v449_v9 = vmul.f32 %v564_v6, %v367_v52 }
 0x2a6   :  { %v376_v56 = vpop.f32.mrb[5].mxu1  ;;  %v382_v57 = vadd.f32 %v634_v54, %v559_v48  ;;  %v454_v25 = vadd.f32 %v450_v13, %v439_v15 }
 0x2a7   :  { %665 = vpow2.f32 %v458_v53  ;;  %v377_v58 = vadd.f32 %v559_v48, %v376_v56  ;;  %v453_v18 = vadd.f32 %v449_v9, %v438_v10 }
 0x2a8   :  { %667 = vpow2.f32 %v460_v55  ;;  %v464_v60 = vmul.f32 1.442695, %v382_v57  ;;  %v452_v22 = vmul.f32 %v564_v6, %v382_v57 }
 0x2a9   :  { %v462_v59 = vmul.f32 1.442695, %v377_v58  ;;  %v451_v17 = vmul.f32 %v564_v6, %v377_v58 }
 0x2aa   :  { %v456_v40 = vadd.f32 %v452_v22, %v441_v27 }
 0x2ab   :  { %669 = vpow2.f32 %v462_v59  ;;  %v455_v29 = vadd.f32 %v451_v17, %v440_v20 }
 0x2ac   :  { %671 = vpow2.f32 %v464_v60 }
 0x2b1   :  { %v666_v61 = vpop.eup %665 }
 0x2b2   :  { %476 = vrot.lane.b32.xlu0 %v666_v61, %s688_s28  ;;  %v668_v62 = vpop.eup %667 }
 0x2b5   :  { %v670_v63 = vpop.eup %669 }
 0x2b6   :  { %480 = vrot.lane.b32.xlu1 %v670_v63, %s688_s28  ;;  %478 = vrot.lane.b32.xlu0 %v668_v62, %s688_s28  ;;  %v672_v0 = vpop.eup %671 }
 0x2ba   :  { %482 = vrot.lane.b32.xlu1 %v672_v0, %s688_s28  ;;  %527 = vrot.lane.b32.xlu0 %v367_v52, %s688_s28 }
 0x2be   :  { %529 = vrot.lane.b32.xlu1 %v372_v50, %s688_s28  ;;  %531 = vrot.lane.b32.xlu0 %v377_v58, %s688_s28 }
 0x2c2   :  { %533 = vrot.lane.b32.xlu1 %v382_v57, %s688_s28 }
 0x324   :  { %v477_v14 = vpop.permute.xlu0 %476 }
 0x325   :  { %v488_v19 = vmul.f32 %v565_v12, %v477_v14 }
 0x327   :  { %v492_v21 = vadd.f32 %v488_v19, %v453_v18 }
 0x328   :  { %v481_v24 = vpop.permute.xlu1 %480  ;;  %v479_v26 = vpop.permute.xlu0 %478 }
 0x329   :  { %v510_v28 = vmax.f32 %v492_v21, 0.0  ;;  %v490_v30 = vmul.f32 %v565_v12, %v481_v24  ;;  %v489_v31 = vmul.f32 %v565_v12, %v479_v26 }
 0x32b   :  { %v514_v32 = vmin.f32 %v498_v23, %v510_v28  ;;  %v494_v33 = vadd.f32 %v490_v30, %v455_v29  ;;  %v493_v34 = vadd.f32 %v489_v31, %v454_v25 }
 0x32c   :  { %v483_v36 = vpop.permute.xlu1 %482  ;;  %v528_v37 = vpop.permute.xlu0 %527 }
 0x32d   :  { %v512_v38 = vmax.f32 %v494_v33, 0.0  ;;  %v511_v39 = vmax.f32 %v493_v34, 0.0  ;;  %v491_v41 = vmul.f32 %v565_v12, %v483_v36  ;;  %519 = vst.msk [vmem:[%s867_s10] sm:$0xff] %vm518_vm1, %v514_v32 }
 0x32e   :  { %540 = vst.msk [vmem:[%s867_s10] sm:$0xff] %vm539_vm2, %v528_v37 }
 0x32f   :  { %v516_v42 = vmin.f32 %v505_v35, %v512_v38  ;;  %v515_v43 = vmin.f32 %v498_v23, %v511_v39  ;;  %v495_v44 = vadd.f32 %v491_v41, %v456_v40 }
 0x330   :  { %v530_v45 = vpop.permute.xlu1 %529  ;;  %v532_v46 = vpop.permute.xlu0 %531 }
 0x331   :  { %v513_v47 = vmax.f32 %v495_v44, 0.0  ;;  %520 = vst.msk [vmem:[%s867_s10 + $0x8] sm:$0xff] %vm518_vm1, %v515_v43  ;;  %521 = vst.msk [vmem:[%s867_s10 + $0x10] sm:$0xff] %vm518_vm1, %v516_v42 }
 0x332   :  { %541 = vst.msk [vmem:[%s867_s10 + $0x8] sm:$0xff] %vm539_vm2, %v530_v45  ;;  %542 = vst.msk [vmem:[%s867_s10 + $0x10] sm:$0xff] %vm539_vm2, %v532_v46 }
 0x333   :  { %v517_v48 = vmin.f32 %v505_v35, %v513_v47 }
 0x334   :  { %v534_v49 = vpop.permute.xlu1 %533 }
 0x335   :  { %522 = vst.msk [vmem:[%s867_s10 + $0x18] sm:$0xff] %vm518_vm1, %v517_v48 }
 0x336   :  { %543 = vst.msk [vmem:[%s867_s10 + $0x18] sm:$0xff] %vm539_vm2, %v534_v49 }
 0x337   :  { %548 = vsyncpa [#allocation3], 1 }

</bundles_post_ra>
